<compile_context>
chip_gen: v6e
topology: v6e:2x2x1
jax: 0.10.0
libtpu: 0.0.40
codegen_flags: <defaults>
</compile_context>

<pallas_src>
import functools

import jax
import jax.numpy as jnp
from jax.experimental import pallas as pl
from jax.experimental.pallas import tpu as pltpu


# ----------------------------------------------------------------------------
# Fused Pallas kernel
# ----------------------------------------------------------------------------
def _side_conv_kernel(x_ref, w1k_ref, c_ref, ryp_ref, o_ref):
    # x_ref:   (Nb, Hin, Win*Cin)       input slab (channels-last, W*C on lanes)
    # w1k_ref: (Win*Cin, Win*Cout)      kron(I_Win, W1)               (1x1 conv)
    # c_ref:   (Win*Cout, 3*Wout*Cout)  [C_0 | C_1 | C_2], C_dy = rxpc @ B_dy
    #                                   (W resize + reflect pad + 3x3 dx taps)
    # ryp_ref: (3, Hout, Hin)           Ryp_pad[dy:dy+Hout]  (H resize + pad)
    # o_ref:   (Nb, Hout, Wout*Cout)
    f32 = jnp.float32
    nb, hin, wcin = x_ref.shape
    _, hout, woc = o_ref.shape

    # 1) 1x1 conv + ReLU on the whole (Nb*Hin) slab -> one MXU weight push.
    x2 = x_ref[...].reshape(nb * hin, wcin)            # layout-free: hin % 8 == 0
    y = jnp.maximum(jnp.dot(x2, w1k_ref[...], preferred_element_type=f32), 0.0)

    # 2) W-resize + reflect pad + 3x3 dx/c_in taps, all three dy banks fused
    #    into one K=128 matmul (single weight push).
    t = jnp.dot(y, c_ref[...], preferred_element_type=f32)   # (Nb*Hin, 3*Wout*Cout)

    # 3) H-resize + reflect pad + dy reduction: tiny K=Hin matmuls, per batch
    #    item, over 8-aligned row slices and 256-aligned lane slices.
    for b in range(nb):
        tb = t[b * hin:(b + 1) * hin]
        acc = jnp.zeros((hout, woc), f32)
        for dy in range(3):
            acc = acc + jnp.dot(ryp_ref[dy], tb[:, dy * woc:(dy + 1) * woc],
                                preferred_element_type=f32)
        o_ref[b] = acc.astype(o_ref.dtype)


# ----------------------------------------------------------------------------
# Host-side packing of the constant matrices (run ONCE per weight set)
# ----------------------------------------------------------------------------
def _resize_matrix(out_size, in_size):
    """PyTorch bilinear interpolation matrix, align_corners=False."""
    scale = in_size / out_size
    o = jnp.arange(out_size, dtype=jnp.float32)
    src = jnp.maximum((o + 0.5) * scale - 0.5, 0.0)
    i0 = jnp.clip(jnp.floor(src).astype(jnp.int32), 0, in_size - 1)
    i1 = jnp.minimum(i0 + 1, in_size - 1)
    lam = src - i0.astype(jnp.float32)
    m = (jax.nn.one_hot(i0, in_size, dtype=jnp.float32) * (1.0 - lam)[:, None]
         + jax.nn.one_hot(i1, in_size, dtype=jnp.float32) * lam[:, None])
    return m  # (out_size, in_size)


def _fold_reflect_pad(m):
    # ReflectionPad2d(1) commutes with the interpolation matmul; fold it in.
    return jnp.concatenate([m[1:2], m, m[-2:-1]], axis=0)


def _build_conv_bands(w3, Wout, Cout):
    """B_dy[(w+dx)*Cout + c, w*Cout + co] = w3[co, c, dy, dx]  (else 0)."""
    Wp = Wout + 2
    bands = []
    for dy in range(3):
        B = jnp.zeros((Wp, Cout, Wout, Cout), jnp.float32)
        for dx in range(3):
            tap = jnp.transpose(w3[:, :, dy, dx]).astype(jnp.float32)  # (c_in, c_out)
            sel = jnp.eye(Wp, Wout, k=-dx, dtype=jnp.float32)          # sel[w+dx, w] = 1
            B = B + sel[:, None, :, None] * tap[None, :, None, :]
        bands.append(B.reshape(Wp * Cout, Wout * Cout))
    return jnp.stack(bands)  # (3, (Wout+2)*Cout, Wout*Cout)


def pack_side_conv_params(w1, w3, in_hw, out_hw):
    """Pre-contract every constant matrix. Call once per weight set / geometry."""
    Hin, Win = in_hw
    Hout, Wout = out_hw
    Cout = w1.shape[0]

    # 1x1 conv acting on (rows, Win*Cin) slabs.
    w1m = jnp.transpose(w1[:, :, 0, 0], (1, 0)).astype(jnp.float32)     # (Cin, Cout)
    w1k = jnp.kron(jnp.eye(Win, dtype=jnp.float32), w1m)                # (Win*Cin, Win*Cout)
    # TODO(synk): kron(I_Win, W1) grows as O(Win^2*Cin*Cout); for large Win switch
    # stage 1 to an (N*H*W, Cin)@(Cin, Cout) formulation instead.

    # H-resize with reflection pad folded in, pre-shifted per conv row offset dy.
    ryp = _fold_reflect_pad(_resize_matrix(Hout, Hin))                  # (Hout+2, Hin)
    ryp3 = jnp.stack([ryp[dy:dy + Hout] for dy in range(3)])            # (3, Hout, Hin)

    # W-resize + reflection pad + 3x3-conv (dx, c_in) taps, pre-contracted:
    #   C_dy = kron(Rxp_pad, I_Cout)^T @ B_dy
    rxp = _fold_reflect_pad(_resize_matrix(Wout, Win))                  # (Wout+2, Win)
    rxpc = jnp.kron(rxp, jnp.eye(Cout, dtype=jnp.float32)).T            # (Win*Cout, (Wout+2)*Cout)
    bands = _build_conv_bands(w3, Wout, Cout)                           # (3, (Wout+2)*Cout, Wout*Cout)
    c_cat = jnp.concatenate([rxpc @ bands[dy] for dy in range(3)],
                            axis=1)                                     # (Win*Cout, 3*Wout*Cout)

    return w1k, ryp3, c_cat


# ----------------------------------------------------------------------------
# Public forward pass (packed weights are precomputed, not rebuilt per call)
# ----------------------------------------------------------------------------
@functools.partial(jax.jit, static_argnames=("size", "batch_block"))
def side_conv_forward(x_nchw, size, w1k, ryp3, c_cat, batch_block=8):
    """SideConv forward.

    x_nchw: (N, Cin, Hin, Win) float32
    size:   (Hout, Wout)
    w1k, ryp3, c_cat: output of pack_side_conv_params
    returns (N, Cout, Hout, Wout)
    """
    N, Cin, Hin, Win = x_nchw.shape
    Hout, Wout = size
    Cout = w1k.shape[1] // Win
    woc = Wout * Cout

    # Batch items per grid step (amortizes weight pushes and per-step overhead).
    nb = min(int(batch_block), N)
    n_pad = pl.cdiv(N, nb) * nb

    # --- NCHW -> (N, Hin, Win*Cin) packed channels-last glue ---
    # TODO(synk): accept/produce channels-last at the module boundary to drop
    # these HBM-round-trip transposes when integrating into a larger model.
    x2d = (jnp.transpose(x_nchw, (0, 2, 3, 1))
           .reshape(N, Hin, Win * Cin).astype(jnp.float32))
    if n_pad != N:
        x2d = jnp.pad(x2d, ((0, n_pad - N), (0, 0), (0, 0)))

    out2d = pl.pallas_call(
        _side_conv_kernel,
        out_shape=jax.ShapeDtypeStruct((n_pad, Hout, woc), jnp.float32),
        grid=(n_pad // nb,),
        in_specs=[
            pl.BlockSpec((nb, Hin, Win * Cin), lambda g: (g, 0, 0)),
            pl.BlockSpec(w1k.shape, lambda g: (0, 0)),      # resident weights
            pl.BlockSpec(c_cat.shape, lambda g: (0, 0)),    # (constant index maps)
            pl.BlockSpec(ryp3.shape, lambda g: (0, 0, 0)),
        ],
        out_specs=pl.BlockSpec((nb, Hout, woc), lambda g: (g, 0, 0)),
        compiler_params=pltpu.CompilerParams(
            dimension_semantics=("parallel",),
            vmem_limit_bytes=32 * 1024 * 1024,
        ),
    )(x2d, w1k, c_cat, ryp3)

    out = out2d[:N].reshape(N, Hout, Wout, Cout)
    return jnp.transpose(out, (0, 3, 1, 2))


# ----------------------------------------------------------------------------
# Pure-JAX reference (independent of the Pallas path) for a sanity check
# ----------------------------------------------------------------------------
def _bilinear_resize_ref(y, out_h, out_w):  # y: NCHW, PyTorch align_corners=False
    N, C, H, W = y.shape

    def idx(out_size, in_size):
        src = (jnp.arange(out_size, dtype=jnp.float32) + 0.5) * (in_size / out_size) - 0.5
        src = jnp.maximum(src, 0.0)
        i0 = jnp.clip(jnp.floor(src).astype(jnp.int32), 0, in_size - 1)
        i1 = jnp.minimum(i0 + 1, in_size - 1)
        lam = src - i0.astype(jnp.float32)
        return i0, i1, lam

    r0, r1, rl = idx(out_h, H)
    c0, c1, cl = idx(out_w, W)
    top = (y[:, :, r0, :] * (1.0 - rl)[None, None, :, None]
           + y[:, :, r1, :] * rl[None, None, :, None])
    out = top[:, :, :, c0] * (1.0 - cl) + top[:, :, :, c1] * cl
    return out


def _reference(x_nchw, size, w1, w3):
    dn = ("NCHW", "OIHW", "NCHW")
    y = jax.lax.conv_general_dilated(x_nchw, w1, (1, 1), "VALID",
                                     dimension_numbers=dn)
    y = jnp.maximum(y, 0.0)
    z = _bilinear_resize_ref(y, size[0], size[1])
    zp = jnp.pad(z, ((0, 0), (0, 0), (1, 1), (1, 1)), mode="reflect")
    return jax.lax.conv_general_dilated(zp, w3, (1, 1), "VALID",
                                        dimension_numbers=dn)


# ----------------------------------------------------------------------------
if __name__ == "__main__":
    key = jax.random.PRNGKey(0)
    k_x, k_w1, k_w3 = jax.random.split(key, 3)

    N, Cin, Cout, Hin, Win = 2, 4, 8, 16, 16
    size = (32, 32)

    x = jax.random.normal(k_x, (N, Cin, Hin, Win), dtype=jnp.float32)
    w1 = jax.random.normal(k_w1, (Cout, Cin, 1, 1), dtype=jnp.float32) * 0.1
    w3 = jax.random.normal(k_w3, (Cout, Cout, 3, 3), dtype=jnp.float32) * 0.1

    # Pack the constant matrices ONCE (hoisted out of the per-call jitted path).
    w1k, ryp3, c_cat = pack_side_conv_params(w1, w3, (Hin, Win), size)
    w1k, ryp3, c_cat = jax.block_until_ready((w1k, ryp3, c_cat))

    out = side_conv_forward(x, size, w1k, ryp3, c_cat)
    out = jax.block_until_ready(out)

    ref = _reference(x, size, w1, w3)
    assert out.shape == (N, Cout, size[0], size[1])
    assert jnp.allclose(out, ref, rtol=1e-4, atol=1e-4), "mismatch vs reference"

    print("KERNEL_OK")
</pallas_src>

<mosaic_0001>
module attributes {stable_mosaic.version = 11 : i64} {
  func.func @_side_conv_kernel(%arg0: i32, %arg1: memref<2x16x64xf32, #tpu.memory_space<vmem>>, %arg2: memref<64x128xf32, #tpu.memory_space<vmem>>, %arg3: memref<128x768xf32, #tpu.memory_space<vmem>>, %arg4: memref<3x32x16xf32, #tpu.memory_space<vmem>>, %arg5: memref<2x32x256xf32, #tpu.memory_space<vmem>>) attributes {dimension_semantics = [#tpu.dimension_semantics<parallel>], iteration_bounds = array<i64: 1>, scalar_prefetch = 0 : i64, scratch_operands = 0 : i64, tpu.core_type = #tpu.core_type<tc>, window_params = [{transform_indices = @transform_0, window_bounds = array<i64: 2, 16, 64>}, {pipeline_mode = #tpu.pipeline_mode<synchronous>, transform_indices = @transform_1, window_bounds = array<i64: 64, 128>}, {pipeline_mode = #tpu.pipeline_mode<synchronous>, transform_indices = @transform_2, window_bounds = array<i64: 128, 768>}, {pipeline_mode = #tpu.pipeline_mode<synchronous>, transform_indices = @transform_3, window_bounds = array<i64: 3, 32, 16>}, {transform_indices = @transform_4, window_bounds = array<i64: 2, 32, 256>}]} {
    %c0 = arith.constant 0 : index
    %c0_0 = arith.constant 0 : index
    %c0_1 = arith.constant 0 : index
    %0 = vector.load %arg1[%c0, %c0_0, %c0_1] : memref<2x16x64xf32, #tpu.memory_space<vmem>>, vector<2x16x64xf32>
    %1 = vector.shape_cast %0 : vector<2x16x64xf32> to vector<32x64xf32>
    %c0_2 = arith.constant 0 : index
    %c0_3 = arith.constant 0 : index
    %2 = vector.load %arg2[%c0_2, %c0_3] : memref<64x128xf32, #tpu.memory_space<vmem>>, vector<64x128xf32>
    %cst = arith.constant dense<0.000000e+00> : vector<32x128xf32>
    %3 = tpu.matmul %1, %2, %cst {dimension_numbers = #tpu.dot_dimension_numbers<[1], [0], [0], [1], [0, 0, 1, 1], [], []>} : vector<32x64xf32>, vector<64x128xf32>, vector<32x128xf32> -> vector<32x128xf32>
    %cst_4 = arith.constant 0.000000e+00 : f32
    %4 = vector.broadcast %cst_4 : f32 to vector<32x128xf32>
    %5 = arith.maximumf %3, %4 : vector<32x128xf32>
    %c0_5 = arith.constant 0 : index
    %c0_6 = arith.constant 0 : index
    %6 = vector.load %arg3[%c0_5, %c0_6] : memref<128x768xf32, #tpu.memory_space<vmem>>, vector<128x768xf32>
    %cst_7 = arith.constant dense<0.000000e+00> : vector<32x768xf32>
    %7 = tpu.matmul %5, %6, %cst_7 {dimension_numbers = #tpu.dot_dimension_numbers<[1], [0], [0], [1], [0, 0, 1, 1], [], []>} : vector<32x128xf32>, vector<128x768xf32>, vector<32x768xf32> -> vector<32x768xf32>
    %8 = vector.extract_strided_slice %7 {offsets = [0, 0], sizes = [16, 768], strides = [1, 1]} : vector<32x768xf32> to vector<16x768xf32>
    %cst_8 = arith.constant 0.000000e+00 : f32
    %9 = vector.broadcast %cst_8 : f32 to vector<32x256xf32>
    %c0_9 = arith.constant 0 : index
    %c0_10 = arith.constant 0 : index
    %c0_11 = arith.constant 0 : index
    %10 = vector.load %arg4[%c0_9, %c0_10, %c0_11] : memref<3x32x16xf32, #tpu.memory_space<vmem>>, vector<1x32x16xf32>
    %11 = vector.shape_cast %10 : vector<1x32x16xf32> to vector<32x16xf32>
    %12 = vector.extract_strided_slice %8 {offsets = [0, 0], sizes = [16, 256], strides = [1, 1]} : vector<16x768xf32> to vector<16x256xf32>
    %cst_12 = arith.constant dense<0.000000e+00> : vector<32x256xf32>
    %13 = tpu.matmul %11, %12, %cst_12 {dimension_numbers = #tpu.dot_dimension_numbers<[1], [0], [0], [1], [0, 0, 1, 1], [], []>} : vector<32x16xf32>, vector<16x256xf32>, vector<32x256xf32> -> vector<32x256xf32>
    %14 = arith.addf %9, %13 : vector<32x256xf32>
    %c1 = arith.constant 1 : index
    %c0_13 = arith.constant 0 : index
    %c0_14 = arith.constant 0 : index
    %15 = vector.load %arg4[%c1, %c0_13, %c0_14] : memref<3x32x16xf32, #tpu.memory_space<vmem>>, vector<1x32x16xf32>
    %16 = vector.shape_cast %15 : vector<1x32x16xf32> to vector<32x16xf32>
    %17 = vector.extract_strided_slice %8 {offsets = [0, 256], sizes = [16, 256], strides = [1, 1]} : vector<16x768xf32> to vector<16x256xf32>
    %cst_15 = arith.constant dense<0.000000e+00> : vector<32x256xf32>
    %18 = tpu.matmul %16, %17, %cst_15 {dimension_numbers = #tpu.dot_dimension_numbers<[1], [0], [0], [1], [0, 0, 1, 1], [], []>} : vector<32x16xf32>, vector<16x256xf32>, vector<32x256xf32> -> vector<32x256xf32>
    %19 = arith.addf %14, %18 : vector<32x256xf32>
    %c2 = arith.constant 2 : index
    %c0_16 = arith.constant 0 : index
    %c0_17 = arith.constant 0 : index
    %20 = vector.load %arg4[%c2, %c0_16, %c0_17] : memref<3x32x16xf32, #tpu.memory_space<vmem>>, vector<1x32x16xf32>
    %21 = vector.shape_cast %20 : vector<1x32x16xf32> to vector<32x16xf32>
    %22 = vector.extract_strided_slice %8 {offsets = [0, 512], sizes = [16, 256], strides = [1, 1]} : vector<16x768xf32> to vector<16x256xf32>
    %cst_18 = arith.constant dense<0.000000e+00> : vector<32x256xf32>
    %23 = tpu.matmul %21, %22, %cst_18 {dimension_numbers = #tpu.dot_dimension_numbers<[1], [0], [0], [1], [0, 0, 1, 1], [], []>} : vector<32x16xf32>, vector<16x256xf32>, vector<32x256xf32> -> vector<32x256xf32>
    %24 = arith.addf %19, %23 : vector<32x256xf32>
    %c0_19 = arith.constant 0 : index
    %c0_20 = arith.constant 0 : index
    %c0_21 = arith.constant 0 : index
    %25 = vector.load %arg5[%c0_19, %c0_20, %c0_21] : memref<2x32x256xf32, #tpu.memory_space<vmem>>, vector<1x32x256xf32>
    %26 = vector.shape_cast %25 : vector<1x32x256xf32> to vector<32x256xf32>
    %27 = vector.shape_cast %24 : vector<32x256xf32> to vector<1x32x256xf32>
    tpu.vector_store %arg5[%c0_19, %c0_20, %c0_21], %27 {strides = array<i32>} : memref<2x32x256xf32, #tpu.memory_space<vmem>>, vector<1x32x256xf32>,
    %28 = vector.extract_strided_slice %7 {offsets = [16, 0], sizes = [16, 768], strides = [1, 1]} : vector<32x768xf32> to vector<16x768xf32>
    %cst_22 = arith.constant 0.000000e+00 : f32
    %29 = vector.broadcast %cst_22 : f32 to vector<32x256xf32>
    %c0_23 = arith.constant 0 : index
    %c0_24 = arith.constant 0 : index
    %c0_25 = arith.constant 0 : index
    %30 = vector.load %arg4[%c0_23, %c0_24, %c0_25] : memref<3x32x16xf32, #tpu.memory_space<vmem>>, vector<1x32x16xf32>
    %31 = vector.shape_cast %30 : vector<1x32x16xf32> to vector<32x16xf32>
    %32 = vector.extract_strided_slice %28 {offsets = [0, 0], sizes = [16, 256], strides = [1, 1]} : vector<16x768xf32> to vector<16x256xf32>
    %cst_26 = arith.constant dense<0.000000e+00> : vector<32x256xf32>
    %33 = tpu.matmul %31, %32, %cst_26 {dimension_numbers = #tpu.dot_dimension_numbers<[1], [0], [0], [1], [0, 0, 1, 1], [], []>} : vector<32x16xf32>, vector<16x256xf32>, vector<32x256xf32> -> vector<32x256xf32>
    %34 = arith.addf %29, %33 : vector<32x256xf32>
    %c1_27 = arith.constant 1 : index
    %c0_28 = arith.constant 0 : index
    %c0_29 = arith.constant 0 : index
    %35 = vector.load %arg4[%c1_27, %c0_28, %c0_29] : memref<3x32x16xf32, #tpu.memory_space<vmem>>, vector<1x32x16xf32>
    %36 = vector.shape_cast %35 : vector<1x32x16xf32> to vector<32x16xf32>
    %37 = vector.extract_strided_slice %28 {offsets = [0, 256], sizes = [16, 256], strides = [1, 1]} : vector<16x768xf32> to vector<16x256xf32>
    %cst_30 = arith.constant dense<0.000000e+00> : vector<32x256xf32>
    %38 = tpu.matmul %36, %37, %cst_30 {dimension_numbers = #tpu.dot_dimension_numbers<[1], [0], [0], [1], [0, 0, 1, 1], [], []>} : vector<32x16xf32>, vector<16x256xf32>, vector<32x256xf32> -> vector<32x256xf32>
    %39 = arith.addf %34, %38 : vector<32x256xf32>
    %c2_31 = arith.constant 2 : index
    %c0_32 = arith.constant 0 : index
    %c0_33 = arith.constant 0 : index
    %40 = vector.load %arg4[%c2_31, %c0_32, %c0_33] : memref<3x32x16xf32, #tpu.memory_space<vmem>>, vector<1x32x16xf32>
    %41 = vector.shape_cast %40 : vector<1x32x16xf32> to vector<32x16xf32>
    %42 = vector.extract_strided_slice %28 {offsets = [0, 512], sizes = [16, 256], strides = [1, 1]} : vector<16x768xf32> to vector<16x256xf32>
    %cst_34 = arith.constant dense<0.000000e+00> : vector<32x256xf32>
    %43 = tpu.matmul %41, %42, %cst_34 {dimension_numbers = #tpu.dot_dimension_numbers<[1], [0], [0], [1], [0, 0, 1, 1], [], []>} : vector<32x16xf32>, vector<16x256xf32>, vector<32x256xf32> -> vector<32x256xf32>
    %44 = arith.addf %39, %43 : vector<32x256xf32>
    %c1_35 = arith.constant 1 : index
    %c0_36 = arith.constant 0 : index
    %c0_37 = arith.constant 0 : index
    %45 = vector.load %arg5[%c1_35, %c0_36, %c0_37] : memref<2x32x256xf32, #tpu.memory_space<vmem>>, vector<1x32x256xf32>
    %46 = vector.shape_cast %45 : vector<1x32x256xf32> to vector<32x256xf32>
    %47 = vector.shape_cast %44 : vector<32x256xf32> to vector<1x32x256xf32>
    tpu.vector_store %arg5[%c1_35, %c0_36, %c0_37], %47 {strides = array<i32>} : memref<2x32x256xf32, #tpu.memory_space<vmem>>, vector<1x32x256xf32>,
    return
  }
  func.func @transform_0(%arg0: i32) -> (i32, i32, i32) {
    %c0_i32 = arith.constant 0 : i32
    %c0_i32_0 = arith.constant 0 : i32
    %c0_i32_1 = arith.constant 0 : i32
    return %arg0, %c0_i32, %c0_i32_0 : i32, i32, i32
  }
  func.func @transform_1(%arg0: i32) -> (i32, i32) {
    %c0_i32 = arith.constant 0 : i32
    %c0_i32_0 = arith.constant 0 : i32
    %c0_i32_1 = arith.constant 0 : i32
    return %c0_i32, %c0_i32_0 : i32, i32
  }
  func.func @transform_2(%arg0: i32) -> (i32, i32) {
    %c0_i32 = arith.constant 0 : i32
    %c0_i32_0 = arith.constant 0 : i32
    %c0_i32_1 = arith.constant 0 : i32
    return %c0_i32, %c0_i32_0 : i32, i32
  }
  func.func @transform_3(%arg0: i32) -> (i32, i32, i32) {
    %c0_i32 = arith.constant 0 : i32
    %c0_i32_0 = arith.constant 0 : i32
    %c0_i32_1 = arith.constant 0 : i32
    %c0_i32_2 = arith.constant 0 : i32
    return %c0_i32, %c0_i32_0, %c0_i32_1 : i32, i32, i32
  }
  func.func @transform_4(%arg0: i32) -> (i32, i32, i32) {
    %c0_i32 = arith.constant 0 : i32
    %c0_i32_0 = arith.constant 0 : i32
    %c0_i32_1 = arith.constant 0 : i32
    return %arg0, %c0_i32, %c0_i32_0 : i32, i32, i32
  }
}

</mosaic_0001>

<bundles_post_ra>
// kernel: side_conv_forward.1
= control target key start
LH: loop header
LB: loop body
LE: loop exit
PB: predicated region body
PF: predicated region fallthrough
CT: control target
= control target key end

     0   :  { %9 = vsyncpa [#allocation3], 0  ;;  %s1295_s15 = smov [#allocation2]   ;;  %s1530_s0 = inlined_call_operand.vmem [shape: f32[2,16,64], index: 0, kind: input, shape index: {}]   ;;  %s1531_s1 = inlined_call_operand.vmem [shape: f32[64,128], index: 1, kind: input, shape index: {}]   ;;  %s1532_s2 = inlined_call_operand.hbm [shape: f32[128,768], index: 2, kind: input, shape index: {}]   ;;  %s1533_s3 = inlined_call_operand.vmem [shape: f32[3,32,16], index: 3, kind: input, shape index: {}]   ;;  %s1534_s4 = inlined_call_operand.vmem [shape: f32[2,32,256], index: 4, kind: output, shape index: {}]  }
   0x1   :  { %s19_s16 = sshll.u32 %s1295_s15, 4  ;;  %s20_s16 = int_to_ptr.vmem [resolvable:$true] %s19_s16 }
   0x2   :  { %s1281_s17 = scalar_lea.vmem %s20_s16, 12288  ;;  %p1286_p1 = scmp.lt.s32.totalorder %s20_s16, %s20_s16 }
   0x3   :  { %p1282_p0 = scmp.ne.s32.totalorder %s20_s16, %s1281_s17  ;;  %p1287_p2 = scmp.lt.s32.totalorder %s1281_s17, %s1281_s17 }
   0x5   :  { %p1288_p3 = por %p1287_p2, %p1286_p1 }
   0x7   :  { %p1289_p4 = pnand %p1288_p3, %p1282_p0 }
   0x9   :  { %1292 = shalt.err (!%p1289_p4)
}
   0xa   :  { %s1296_s18 = smov 768   ;;  %s1297_s19 = smov 48  }
   0xb   :  { %25 = dma.hbm_to_vmem [thread:$0]  %s1532_s2, 12288, %s20_s16, [#allocation3], %s1296_s18, %s1296_s18, %s1297_s19  }
   0xc   :  { %1293 = dma.done.wait [#allocation3], 12288  }
   0xd   :  { %1294 = vsyncadd [#allocation3], 4294955008  ;;  %v42_v0 = vld [vmem:[%s1531_s1 + $0x38] sm:$0xff]  ;;  %v41_v1 = vld [vmem:[%s1531_s1 + $0x30] sm:$0xff]  ;;  %vm43_vm0 = vcmask 523264   ;;  %vm517_vm1 = vcmask 130048  }
   0xe   :  { %1243 = vmatprep.subr.mxu0 %v42_v0  ;;  %v40_v2 = vld [vmem:[%s1531_s1 + $0x28] sm:$0xff]  ;;  %v31_v3 = vld [vmem:[%s1530_s0] sm:$0xff]  ;;  %v236_v5 = vld [vmem:[#allocation2 + $0x2d8] sm:$0xff] }
   0xf   :  { %1244 = vmatpush3.msra.mxu0 %v42_v0  ;;  %1259 = vmatprep.mubr.msk.f32.mxu0 %vm43_vm0, %v31_v3  ;;  %v39_v4 = vld [vmem:[%s1531_s1 + $0x20] sm:$0xff]  ;;  %v235_v6 = vld [vmem:[#allocation2 + $0x2d0] sm:$0xff]  ;;  %v230_v7 = vld [vmem:[#allocation2 + $0x2a8] sm:$0xff] }
  0x10   :  { %1245 = vmatprep.subr.mxu0 %v41_v1  ;;  %241 = vmatprep.subr.mxu1 %v236_v5  ;;  %v229_v8 = vld [vmem:[#allocation2 + $0x2a0] sm:$0xff]  ;;  %v38_v9 = vld [vmem:[%s1531_s1 + $0x18] sm:$0xff]  ;;  %v223_v11 = vld [vmem:[#allocation2 + $0x270] sm:$0xff] }
  0x11   :  { %1246 = vmatpush3.msra.mxu0 %v41_v1  ;;  %242 = vmatpush1.msra.mxu1 %v235_v6  ;;  %v224_v10 = vld [vmem:[#allocation2 + $0x278] sm:$0xff]  ;;  %v37_v12 = vld [vmem:[%s1531_s1 + $0x10] sm:$0xff]  ;;  %v218_v13 = vld [vmem:[#allocation2 + $0x248] sm:$0xff] }
  0x12   :  { %1247 = vmatprep.subr.mxu0 %v40_v2  ;;  %243 = vmatprep.subr.mxu1 %v230_v7  ;;  %v217_v14 = vld [vmem:[#allocation2 + $0x240] sm:$0xff]  ;;  %v36_v15 = vld [vmem:[%s1531_s1 + $0x8] sm:$0xff]  ;;  %v212_v16 = vld [vmem:[#allocation2 + $0x218] sm:$0xff] }
  0x13   :  { %1248 = vmatpush3.msra.mxu0 %v40_v2  ;;  %244 = vmatpush1.msra.mxu1 %v229_v8  ;;  %v211_v17 = vld [vmem:[#allocation2 + $0x210] sm:$0xff]  ;;  %v35_v18 = vld [vmem:[%s1531_s1] sm:$0xff]  ;;  %v206_v19 = vld [vmem:[#allocation2 + $0x1e8] sm:$0xff] }
  0x14   :  { %1249 = vmatprep.subr.mxu0 %v39_v4  ;;  %245 = vmatprep.subr.mxu1 %v224_v10  ;;  %v205_v20 = vld [vmem:[#allocation2 + $0x1e0] sm:$0xff]  ;;  %v32_v21 = vld [vmem:[%s1530_s0 + $0x8] sm:$0xff]  ;;  %v33_v23 = vld [vmem:[%s1530_s0 + $0x10] sm:$0xff] }
  0x15   :  { %1250 = vmatpush3.msra.mxu0 %v39_v4  ;;  %246 = vmatpush1.msra.mxu1 %v223_v11  ;;  %v238_v22 = vld [vmem:[#allocation2 + $0x2e8] sm:$0xff]  ;;  %v237_v24 = vld [vmem:[#allocation2 + $0x2e0] sm:$0xff]  ;;  %v232_v25 = vld [vmem:[#allocation2 + $0x2b8] sm:$0xff] }
  0x16   :  { %1251 = vmatprep.subr.mxu0 %v38_v9  ;;  %247 = vmatprep.subr.mxu1 %v218_v13  ;;  %v200_v26 = vld [vmem:[#allocation2 + $0x1b8] sm:$0xff]  ;;  %v231_v27 = vld [vmem:[#allocation2 + $0x2b0] sm:$0xff]  ;;  %v226_v30 = vld [vmem:[#allocation2 + $0x288] sm:$0xff]  ;;  %v1298_v13 = vmov 0.0  }
  0x17   :  { %1252 = vmatpush3.msra.mxu0 %v38_v9  ;;  %248 = vmatpush1.msra.mxu1 %v217_v14  ;;  %v199_v28 = vld [vmem:[#allocation2 + $0x1b0] sm:$0xff]  ;;  %v34_v29 = vld [vmem:[%s1530_s0 + $0x18] sm:$0xff]  ;;  %v225_v31 = vld [vmem:[#allocation2 + $0x280] sm:$0xff] }
  0x18   :  { %1253 = vmatprep.subr.mxu0 %v37_v12  ;;  %249 = vmatprep.subr.mxu1 %v212_v16  ;;  %v194_v32 = vld [vmem:[#allocation2 + $0x188] sm:$0xff]  ;;  %v220_v33 = vld [vmem:[#allocation2 + $0x258] sm:$0xff]  ;;  %v193_v34 = vld [vmem:[#allocation2 + $0x180] sm:$0xff] }
  0x19   :  { %1254 = vmatpush3.msra.mxu0 %v37_v12  ;;  %250 = vmatpush1.msra.mxu1 %v211_v17  ;;  %v219_v35 = vld [vmem:[#allocation2 + $0x250] sm:$0xff]  ;;  %v188_v36 = vld [vmem:[#allocation2 + $0x158] sm:$0xff]  ;;  %v214_v37 = vld [vmem:[#allocation2 + $0x228] sm:$0xff] }
  0x1a   :  { %1255 = vmatprep.subr.mxu0 %v36_v15  ;;  %251 = vmatprep.subr.mxu1 %v206_v19  ;;  %v187_v38 = vld [vmem:[#allocation2 + $0x150] sm:$0xff]  ;;  %v213_v39 = vld [vmem:[#allocation2 + $0x220] sm:$0xff]  ;;  %v182_v40 = vld [vmem:[#allocation2 + $0x128] sm:$0xff] }
  0x1b   :  { %1256 = vmatpush3.msra.mxu0 %v36_v15  ;;  %252 = vmatpush1.msra.mxu1 %v205_v20  ;;  %v208_v41 = vld [vmem:[#allocation2 + $0x1f8] sm:$0xff]  ;;  %v181_v42 = vld [vmem:[#allocation2 + $0x120] sm:$0xff]  ;;  %v207_v43 = vld [vmem:[#allocation2 + $0x1f0] sm:$0xff] }
  0x1c   :  { %1257 = vmatprep.subr.mxu0 %v35_v18  ;;  %253 = vmatprep.subr.mxu1 %v200_v26  ;;  %v176_v44 = vld [vmem:[#allocation2 + $0xf8] sm:$0xff]  ;;  %v202_v45 = vld [vmem:[#allocation2 + $0x1c8] sm:$0xff]  ;;  %v175_v46 = vld [vmem:[#allocation2 + $0xf0] sm:$0xff] }
  0x1d   :  { %1258 = vmatpush3.msra.mxu0 %v35_v18  ;;  %254 = vmatpush1.msra.mxu1 %v199_v28  ;;  %v201_v47 = vld [vmem:[#allocation2 + $0x1c0] sm:$0xff]  ;;  %v170_v48 = vld [vmem:[#allocation2 + $0xc8] sm:$0xff]  ;;  %v196_v49 = vld [vmem:[#allocation2 + $0x198] sm:$0xff] }
  0x1e   :  { %1260 = vmatmul.mubr.msk.f32.vlgmr.msra.gmra.mxu0 %vm43_vm0, %v32_v21  ;;  %330 = vmatprep.subr.mxu0 %v238_v22  ;;  %v169_v50 = vld [vmem:[#allocation2 + $0xc0] sm:$0xff]  ;;  %v195_v51 = vld [vmem:[#allocation2 + $0x190] sm:$0xff]  ;;  %v164_v52 = vld [vmem:[#allocation2 + $0x98] sm:$0xff] }
  0x1f   :  { %1262 = vmatprep.mubr.msk.f32.mxu0 %vm43_vm0, %v33_v23  ;;  %331 = vmatpush1.msra.mxu0 %v237_v24  ;;  %v190_v53 = vld [vmem:[#allocation2 + $0x168] sm:$0xff]  ;;  %v163_v54 = vld [vmem:[#allocation2 + $0x90] sm:$0xff]  ;;  %v189_v55 = vld [vmem:[#allocation2 + $0x160] sm:$0xff] }
  0x20   :  { %332 = vmatprep.subr.mxu0 %v232_v25  ;;  %255 = vmatprep.subr.mxu1 %v194_v32  ;;  %v158_v56 = vld [vmem:[#allocation2 + $0x68] sm:$0xff]  ;;  %v184_v57 = vld [vmem:[#allocation2 + $0x138] sm:$0xff]  ;;  %v157_v58 = vld [vmem:[#allocation2 + $0x60] sm:$0xff] }
  0x21   :  { %333 = vmatpush1.msra.mxu0 %v231_v27  ;;  %256 = vmatpush1.msra.mxu1 %v193_v34  ;;  %v183_v59 = vld [vmem:[#allocation2 + $0x130] sm:$0xff]  ;;  %v178_v60 = vld [vmem:[#allocation2 + $0x108] sm:$0xff]  ;;  %v177_v61 = vld [vmem:[#allocation2 + $0x100] sm:$0xff] }
  0x22   :  { %1263 = vmatmul.mubr.msk.f32.gmra.mxu0 %vm43_vm0, %v34_v29  ;;  %334 = vmatprep.subr.mxu0 %v226_v30  ;;  %v172_v62 = vld [vmem:[#allocation2 + $0xd8] sm:$0xff]  ;;  %v171_v63 = vld [vmem:[#allocation2 + $0xd0] sm:$0xff]  ;;  %v166_v0 = vld [vmem:[#allocation2 + $0xa8] sm:$0xff] }
  0x23   :  { %335 = vmatpush1.msra.mxu0 %v225_v31  ;;  %257 = vmatprep.subr.mxu1 %v188_v36  ;;  %v165_v1 = vld [vmem:[#allocation2 + $0xa0] sm:$0xff]  ;;  %v160_v2 = vld [vmem:[#allocation2 + $0x78] sm:$0xff]  ;;  %v159_v4 = vld [vmem:[#allocation2 + $0x70] sm:$0xff] }
  0x24   :  { %336 = vmatprep.subr.mxu0 %v220_v33  ;;  %258 = vmatpush1.msra.mxu1 %v187_v38  ;;  %v152_v3 = vld [vmem:[#allocation2 + $0x38] sm:$0xff]  ;;  %v151_v5 = vld [vmem:[#allocation2 + $0x30] sm:$0xff]  ;;  %v154_v6 = vld [vmem:[#allocation2 + $0x48] sm:$0xff] }
  0x25   :  { %337 = vmatpush1.msra.mxu0 %v219_v35  ;;  %259 = vmatprep.subr.mxu1 %v182_v40  ;;  %v146_v7 = vld [vmem:[#allocation2 + $0x8] sm:$0xff]  ;;  %v153_v8 = vld [vmem:[#allocation2 + $0x40] sm:$0xff]  ;;  %v148_v10 = vld [vmem:[#allocation2 + $0x18] sm:$0xff] }
  0x26   :  { %338 = vmatprep.subr.mxu0 %v214_v37  ;;  %260 = vmatpush1.msra.mxu1 %v181_v42  ;;  %v145_v9 = vld [vmem:[#allocation2] sm:$0xff]  ;;  %v147_v11 = vld [vmem:[#allocation2 + $0x10] sm:$0xff]  ;;  %v240_v12 = vld [vmem:[#allocation2 + $0x2f8] sm:$0xff] }
  0x27   :  { %339 = vmatpush1.msra.mxu0 %v213_v39  ;;  %261 = vmatprep.subr.mxu1 %v176_v44  ;;  %v239_v17 = vld [vmem:[#allocation2 + $0x2f0] sm:$0xff]  ;;  %v234_v18 = vld [vmem:[#allocation2 + $0x2c8] sm:$0xff]  ;;  %v233_v20 = vld [vmem:[#allocation2 + $0x2c0] sm:$0xff] }
  0x28   :  { %340 = vmatprep.subr.mxu0 %v208_v41  ;;  %262 = vmatpush1.msra.mxu1 %v175_v46  ;;  %v228_v21 = vld [vmem:[#allocation2 + $0x298] sm:$0xff]  ;;  %v227_v23 = vld [vmem:[#allocation2 + $0x290] sm:$0xff]  ;;  %v222_v25 = vld [vmem:[#allocation2 + $0x268] sm:$0xff] }
  0x29   :  { %341 = vmatpush1.msra.mxu0 %v207_v43  ;;  %263 = vmatprep.subr.mxu1 %v170_v48  ;;  %v221_v26 = vld [vmem:[#allocation2 + $0x260] sm:$0xff]  ;;  %v216_v27 = vld [vmem:[#allocation2 + $0x238] sm:$0xff]  ;;  %v215_v29 = vld [vmem:[#allocation2 + $0x230] sm:$0xff] }
  0x2a   :  { %342 = vmatprep.subr.mxu0 %v202_v45  ;;  %264 = vmatpush1.msra.mxu1 %v169_v50  ;;  %v210_v30 = vld [vmem:[#allocation2 + $0x208] sm:$0xff]  ;;  %v209_v31 = vld [vmem:[#allocation2 + $0x200] sm:$0xff]  ;;  %v204_v33 = vld [vmem:[#allocation2 + $0x1d8] sm:$0xff] }
  0x2b   :  { %343 = vmatpush1.msra.mxu0 %v201_v47  ;;  %265 = vmatprep.subr.mxu1 %v164_v52  ;;  %v203_v34 = vld [vmem:[#allocation2 + $0x1d0] sm:$0xff]  ;;  %v198_v35 = vld [vmem:[#allocation2 + $0x1a8] sm:$0xff]  ;;  %v197_v36 = vld [vmem:[#allocation2 + $0x1a0] sm:$0xff] }
  0x2c   :  { %344 = vmatprep.subr.mxu0 %v196_v49  ;;  %266 = vmatpush1.msra.mxu1 %v163_v54  ;;  %v192_v37 = vld [vmem:[#allocation2 + $0x178] sm:$0xff]  ;;  %v191_v38 = vld [vmem:[#allocation2 + $0x170] sm:$0xff]  ;;  %v186_v39 = vld [vmem:[#allocation2 + $0x148] sm:$0xff] }
  0x2d   :  { %345 = vmatpush1.msra.mxu0 %v195_v51  ;;  %267 = vmatprep.subr.mxu1 %v158_v56  ;;  %v185_v40 = vld [vmem:[#allocation2 + $0x140] sm:$0xff]  ;;  %v180_v41 = vld [vmem:[#allocation2 + $0x118] sm:$0xff]  ;;  %v179_v42 = vld [vmem:[#allocation2 + $0x110] sm:$0xff] }
  0x2e   :  { %346 = vmatprep.subr.mxu0 %v190_v53  ;;  %268 = vmatpush1.msra.mxu1 %v157_v58  ;;  %v174_v43 = vld [vmem:[#allocation2 + $0xe8] sm:$0xff]  ;;  %v173_v44 = vld [vmem:[#allocation2 + $0xe0] sm:$0xff]  ;;  %v168_v45 = vld [vmem:[#allocation2 + $0xb8] sm:$0xff] }
  0x2f   :  { %347 = vmatpush1.msra.mxu0 %v189_v55  ;;  %269 = vmatprep.subr.mxu1 %v152_v3  ;;  %v167_v46 = vld [vmem:[#allocation2 + $0xb0] sm:$0xff]  ;;  %v162_v47 = vld [vmem:[#allocation2 + $0x88] sm:$0xff]  ;;  %v161_v48 = vld [vmem:[#allocation2 + $0x80] sm:$0xff] }
  0x30   :  { %348 = vmatprep.subr.mxu0 %v184_v57  ;;  %270 = vmatpush1.msra.mxu1 %v151_v5  ;;  %v156_v49 = vld [vmem:[#allocation2 + $0x58] sm:$0xff]  ;;  %v155_v50 = vld [vmem:[#allocation2 + $0x50] sm:$0xff]  ;;  %v150_v51 = vld [vmem:[#allocation2 + $0x28] sm:$0xff] }
  0x31   :  { %349 = vmatpush1.msra.mxu0 %v183_v59  ;;  %271 = vmatprep.subr.mxu1 %v146_v7  ;;  %v149_v52 = vld [vmem:[#allocation2 + $0x20] sm:$0xff]  ;;  %v509_v7 = vld [vmem:[%s1533_s3 + $0x8] sm:$0xff] }
  0x32   :  { %350 = vmatprep.subr.mxu0 %v178_v60  ;;  %272 = vmatpush1.msra.mxu1 %v145_v9  ;;  %v1417_v5 = vld [vmem:[%s1533_s3] sm:$0xff]  ;;  %v510_v9 = vld [vmem:[%s1533_s3 + $0x10] sm:$0xff] }
  0x33   :  { %351 = vmatpush1.msra.mxu0 %v177_v61  ;;  %305 = vmatprep.mubr.f32.mxu1 %v1298_v13  ;;  %v1183_v61 = vld [vmem:[%s1533_s3 + $0x20] sm:$0xff] }
  0x34   :  { %352 = vmatprep.subr.mxu0 %v172_v62  ;;  %394 = vmatprep.mubr.f32.mxu0 %v1298_v13 }
  0x35   :  { %353 = vmatpush1.msra.mxu0 %v171_v63  ;;  %419 = vmatprep.subr.mxu1 %v240_v12 }
  0x36   :  { %354 = vmatprep.subr.mxu0 %v166_v0  ;;  %v1185_v0 = vld [vmem:[%s1533_s3 + $0x30] sm:$0xff] }
  0x37   :  { %355 = vmatpush1.msra.mxu0 %v165_v1 }
  0x38   :  { %356 = vmatprep.subr.mxu0 %v160_v2  ;;  %v1184_v2 = vld [vmem:[%s1533_s3 + $0x28] sm:$0xff] }
  0x39   :  { %357 = vmatpush1.msra.mxu0 %v159_v4  ;;  %v1186_v4 = vld [vmem:[%s1533_s3 + $0x38] sm:$0xff] }
  0x3a   :  { %358 = vmatprep.subr.mxu0 %v154_v6 }
  0x3b   :  { %359 = vmatpush1.msra.mxu0 %v153_v8 }
  0x3c   :  { %360 = vmatprep.subr.mxu0 %v148_v10 }
  0x3d   :  { %361 = vmatpush1.msra.mxu0 %v147_v11  ;;  %v511_v11 = vld [vmem:[%s1533_s3 + $0x18] sm:$0xff] }
  0xde   :  { %v1261_v14 = vpop.f32.mrf.mxu0 }
  0xdf   :  { %v1374_v22 = vmax.f32 %v1261_v14, 0.0 }
  0xe0   :  { %v122_v15 = vpop.f32.mrf.mxu0 }
  0xe1   :  { %v1369_v16 = vmax.f32 %v122_v15, 0.0 }
  0xe2   :  { %v1264_v19 = vpop.f32.mrf.mxu0 }
  0xe3   :  { %306 = vmatmul.mubr.f32.vlgmr.msra.gmra.mxu1 %v1369_v16  ;;  %395 = vmatmul.mubr.f32.vlgmr.msra.gmra.mxu0 %v1369_v16  ;;  %v144_v32 = vmax.f32 %v1264_v19, 0.0  ;;  %v1195_v19 = vld [vmem:[%s1533_s3 + $0x40] sm:$0xff] }
  0xe4   :  { %420 = vmatpush1.msra.mxu1 %v239_v17  ;;  %311 = vmatprep.mubr.f32.mxu1 %v1298_v13  ;;  %v132_v24 = vpop.f32.mrf.mxu0 }
  0xe5   :  { %421 = vmatprep.subr.mxu1 %v234_v18  ;;  %400 = vmatprep.mubr.f32.mxu0 %v1298_v13  ;;  %v1379_v28 = vmax.f32 %v132_v24, 0.0  ;;  %v1197_v24 = vld [vmem:[%s1533_s3 + $0x50] sm:$0xff] }
  0xe6   :  { %422 = vmatpush1.msra.mxu1 %v233_v20 }
  0xe7   :  { %423 = vmatprep.subr.mxu1 %v228_v21  ;;  %312 = vmatmul.mubr.f32.gmra.mxu1 %v1374_v22 }
  0xe8   :  { %401 = vmatmul.mubr.f32.gmra.mxu0 %v1374_v22  ;;  %424 = vmatpush1.msra.mxu1 %v227_v23 }
  0xe9   :  { %425 = vmatprep.subr.mxu1 %v222_v25  ;;  %406 = vmatprep.mubr.f32.mxu0 %v1298_v13  ;;  %v1198_v25 = vld [vmem:[%s1533_s3 + $0x58] sm:$0xff] }
  0xea   :  { %426 = vmatpush1.msra.mxu1 %v221_v26  ;;  %317 = vmatprep.mubr.f32.mxu1 %v1298_v13 }
  0xeb   :  { %427 = vmatprep.subr.mxu1 %v216_v27  ;;  %318 = vmatmul.mubr.f32.gmra.mxu1 %v1379_v28 }
  0xec   :  { %428 = vmatpush1.msra.mxu1 %v215_v29  ;;  %407 = vmatmul.mubr.f32.gmra.mxu0 %v1379_v28 }
  0xed   :  { %429 = vmatprep.subr.mxu1 %v210_v30  ;;  %412 = vmatprep.mubr.f32.mxu0 %v1298_v13 }
  0xee   :  { %430 = vmatpush1.msra.mxu1 %v209_v31  ;;  %323 = vmatprep.mubr.f32.mxu1 %v1298_v13 }
  0xef   :  { %431 = vmatprep.subr.mxu1 %v204_v33  ;;  %324 = vmatmul.mubr.f32.gmra.mxu1 %v144_v32 }
  0xf0   :  { %432 = vmatpush1.msra.mxu1 %v203_v34  ;;  %413 = vmatmul.mubr.f32.gmra.mxu0 %v144_v32 }
  0xf1   :  { %433 = vmatprep.subr.mxu1 %v198_v35  ;;  %483 = vmatprep.mubr.f32.mxu1 %v1298_v13 }
  0xf2   :  { %434 = vmatpush1.msra.mxu1 %v197_v36  ;;  %594 = vmatprep.mubr.f32.mxu0 %v1298_v13 }
  0xf3   :  { %435 = vmatprep.subr.mxu1 %v192_v37 }
  0xf4   :  { %436 = vmatpush1.msra.mxu1 %v191_v38 }
  0xf5   :  { %437 = vmatprep.subr.mxu1 %v186_v39 }
  0xf6   :  { %438 = vmatpush1.msra.mxu1 %v185_v40 }
  0xf7   :  { %439 = vmatprep.subr.mxu1 %v180_v41 }
  0xf8   :  { %440 = vmatpush1.msra.mxu1 %v179_v42 }
  0xf9   :  { %441 = vmatprep.subr.mxu1 %v174_v43 }
  0xfa   :  { %442 = vmatpush1.msra.mxu1 %v173_v44 }
  0xfb   :  { %443 = vmatprep.subr.mxu1 %v168_v45 }
  0xfc   :  { %444 = vmatpush1.msra.mxu1 %v167_v46 }
  0xfd   :  { %445 = vmatprep.subr.mxu1 %v162_v47 }
  0xfe   :  { %446 = vmatpush1.msra.mxu1 %v161_v48 }
  0xff   :  { %447 = vmatprep.subr.mxu1 %v156_v49 }
 0x100   :  { %448 = vmatpush1.msra.mxu1 %v155_v50 }
 0x101   :  { %449 = vmatprep.subr.mxu1 %v150_v51 }
 0x102   :  { %450 = vmatpush1.msra.mxu1 %v149_v52 }
 0x103   :  { %484 = vmatmul.mubr.f32.vlgmr.msra.gmra.mxu1 %v1369_v16 }
 0x104   :  { %489 = vmatprep.mubr.f32.mxu1 %v1298_v13 }
 0x107   :  { %490 = vmatmul.mubr.f32.gmra.mxu1 %v1374_v22  ;;  %v1196_v22 = vld [vmem:[%s1533_s3 + $0x48] sm:$0xff] }
 0x108   :  { %495 = vmatprep.mubr.f32.mxu1 %v1298_v13 }
 0x10b   :  { %496 = vmatmul.mubr.f32.gmra.mxu1 %v1379_v28 }
 0x10c   :  { %501 = vmatprep.mubr.f32.mxu1 %v1298_v13 }
 0x10f   :  { %502 = vmatmul.mubr.f32.gmra.mxu1 %v144_v32 }
 0x110   :  { %606 = vmatprep.mubr.f32.mxu1 %v1298_v13 }
 0x1a3   :  { %v307_v53 = vpop.f32.mrf.mxu1  ;;  %v396_v54 = vpop.f32.mrf.mxu0 }
 0x1a5   :  { %v398_v55 = vpop.f32.mrf.mxu0  ;;  %v309_v56 = vpop.f32.mrf.mxu1 }
 0x1a7   :  { %v313_v58 = vpop.f32.mrf.mxu1 }
 0x1a8   :  { %v402_v57 = vpop.f32.mrf.mxu0 }
 0x1a9   :  { %v315_v62 = vpop.f32.mrf.mxu1 }
 0x1aa   :  { %v404_v59 = vpop.f32.mrf.mxu0 }
 0x1ab   :  { %558 = vmatprep.subr.mxu0 %v404_v59  ;;  %1265 = vmatprep.subr.mxu1 %v404_v59  ;;  %v319_v6 = vpop.f32.mrf.mxu1 }
 0x1ac   :  { %559 = vmatpush1.msra.mxu0 %v402_v57  ;;  %1267 = vmatpush1.msra.mxu1 %v402_v57  ;;  %v408_v60 = vpop.f32.mrf.mxu0 }
 0x1ad   :  { %560 = vmatprep.subr.mxu0 %v398_v55  ;;  %1266 = vmatprep.subr.mxu1 %v398_v55  ;;  %v321_v8 = vpop.f32.mrf.mxu1 }
 0x1ae   :  { %561 = vmatpush1.msra.mxu0 %v396_v54  ;;  %1268 = vmatpush1.msra.mxu1 %v396_v54  ;;  %v410_v63 = vpop.f32.mrf.mxu0 }
 0x1af   :  { %659 = vmatprep.subr.mxu0 %v315_v62  ;;  %1187 = vmatmul.mubr.msk.f32.vlgmr.msra.gmra.mxu0 %vm517_vm1, %v1183_v61  ;;  %v325_v10 = vpop.f32.mrf.mxu1 }
 0x1b0   :  { %660 = vmatpush1.msra.mxu0 %v313_v58  ;;  %600 = vmatprep.mubr.f32.mxu0 %v1298_v13  ;;  %v414_v1 = vpop.f32.mrf.mxu0 }
 0x1b1   :  { %661 = vmatprep.subr.mxu0 %v309_v56  ;;  %1189 = vmatmul.mubr.msk.f32.vlgmr.msra.gmra.mxu1 %vm517_vm1, %v1185_v0  ;;  %v327_v12 = vpop.f32.mrf.mxu1 }
 0x1b2   :  { %662 = vmatpush1.msra.mxu0 %v307_v53  ;;  %v416_v3 = vpop.f32.mrf.mxu0  ;;  %612 = vmatprep.mubr.f32.mxu1 %v1298_v13 }
 0x1b3   :  { %1188 = vmatmul.mubr.msk.f32.gmra.mxu0 %vm517_vm1, %v1184_v2  ;;  %890 = vmatprep.subr.mxu0 %v416_v3 }
 0x1b4   :  { %695 = vmatprep.mubr.f32.mxu0 %v1298_v13 }
 0x1b5   :  { %1190 = vmatmul.mubr.msk.f32.gmra.mxu1 %vm517_vm1, %v1186_v4 }
 0x1b6   :  { %801 = vmatprep.mubr.f32.mxu1 %v1298_v13 }
 0x1b7   :  { %1191 = vmatmul.mubr.msk.f32.vlgmr.msra.gmra.mxu0 %vm517_vm1, %v1417_v5 }
 0x1b8   :  { %891 = vmatpush1.msra.mxu0 %v414_v1  ;;  %701 = vmatprep.mubr.f32.mxu0 %v1298_v13 }
 0x1b9   :  { %892 = vmatprep.subr.mxu0 %v410_v63 }
 0x1ba   :  { %893 = vmatpush1.msra.mxu0 %v408_v60 }
 0x1bb   :  { %1192 = vmatmul.mubr.msk.f32.gmra.mxu0 %vm517_vm1, %v509_v7 }
 0x1bc   :  { %707 = vmatprep.mubr.f32.mxu0 %v1298_v13 }
 0x1bf   :  { %1193 = vmatmul.mubr.msk.f32.gmra.mxu0 %vm517_vm1, %v510_v9 }
 0x1c0   :  { %713 = vmatprep.mubr.f32.mxu0 %v1298_v13 }
 0x1c3   :  { %v485_v14 = vpop.f32.mrf.mxu1  ;;  %1194 = vmatmul.mubr.msk.f32.gmra.mxu0 %vm517_vm1, %v511_v11 }
 0x1c4   :  { %926 = vmatprep.mubr.f32.mxu0 %v1298_v13 }
 0x1c5   :  { %v487_v15 = vpop.f32.mrf.mxu1 }
 0x1c7   :  { %v491_v16 = vpop.f32.mrf.mxu1  ;;  %1207 = vmatmul.mubr.msk.f32.vlgmr.msra.gmra.mxu0 %vm517_vm1, %v1183_v61 }
 0x1c8   :  { %932 = vmatprep.mubr.f32.mxu0 %v1298_v13 }
 0x1c9   :  { %v493_v17 = vpop.f32.mrf.mxu1 }
 0x1ca   :  { %765 = vmatprep.subr.mxu1 %v493_v17 }
 0x1cb   :  { %v497_v18 = vpop.f32.mrf.mxu1  ;;  %766 = vmatpush1.msra.mxu1 %v491_v16  ;;  %1208 = vmatmul.mubr.msk.f32.gmra.mxu0 %vm517_vm1, %v1184_v2 }
 0x1cc   :  { %767 = vmatprep.subr.mxu1 %v487_v15  ;;  %938 = vmatprep.mubr.f32.mxu0 %v1298_v13 }
 0x1cd   :  { %v499_v20 = vpop.f32.mrf.mxu1  ;;  %768 = vmatpush1.msra.mxu1 %v485_v14 }
 0x1ce   :  { %1199 = vmatmul.mubr.msk.f32.vlgmr.msra.gmra.mxu1 %vm517_vm1, %v1195_v19  ;;  %991 = vmatprep.subr.mxu1 %v327_v12 }
 0x1cf   :  { %v503_v21 = vpop.f32.mrf.mxu1  ;;  %992 = vmatpush1.msra.mxu1 %v325_v10  ;;  %807 = vmatprep.mubr.f32.mxu1 %v1298_v13 }
 0x1d0   :  { %993 = vmatprep.subr.mxu1 %v321_v8  ;;  %1209 = vmatmul.mubr.msk.f32.gmra.mxu0 %vm517_vm1, %v1185_v0 }
 0x1d1   :  { %v505_v23 = vpop.f32.mrf.mxu1  ;;  %994 = vmatpush1.msra.mxu1 %v319_v6  ;;  %944 = vmatprep.mubr.f32.mxu0 %v1298_v13 }
 0x1d2   :  { %1200 = vmatmul.mubr.msk.f32.gmra.mxu1 %vm517_vm1, %v1196_v22  ;;  %1096 = vmatprep.subr.mxu0 %v505_v23 }
 0x1d3   :  { %1097 = vmatpush1.msra.mxu0 %v503_v21  ;;  %813 = vmatprep.mubr.f32.mxu1 %v1298_v13 }
 0x1d4   :  { %1098 = vmatprep.subr.mxu0 %v499_v20  ;;  %1210 = vmatmul.mubr.msk.f32.gmra.mxu0 %vm517_vm1, %v1186_v4 }
 0x1d5   :  { %1099 = vmatpush1.msra.mxu0 %v497_v18  ;;  %1132 = vmatprep.mubr.f32.mxu0 %v1298_v13 }
 0x1d6   :  { %1201 = vmatmul.mubr.msk.f32.gmra.mxu1 %vm517_vm1, %v1197_v24 }
 0x1d7   :  { %819 = vmatprep.mubr.f32.mxu1 %v1298_v13 }
 0x1d8   :  { %1219 = vmatmul.mubr.msk.f32.vlgmr.msra.gmra.mxu0 %vm517_vm1, %v1195_v19 }
 0x1d9   :  { %1138 = vmatprep.mubr.f32.mxu0 %v1298_v13 }
 0x1da   :  { %1202 = vmatmul.mubr.msk.f32.gmra.mxu1 %vm517_vm1, %v1198_v25 }
 0x1db   :  { %1027 = vmatprep.mubr.f32.mxu1 %v1298_v13 }
 0x1dc   :  { %1220 = vmatmul.mubr.msk.f32.gmra.mxu0 %vm517_vm1, %v1196_v22 }
 0x1dd   :  { %1144 = vmatprep.mubr.f32.mxu0 %v1298_v13 }
 0x1de   :  { %1211 = vmatmul.mubr.msk.f32.vlgmr.msra.gmra.mxu1 %vm517_vm1, %v1417_v5 }
 0x1df   :  { %1033 = vmatprep.mubr.f32.mxu1 %v1298_v13 }
 0x1e0   :  { %1221 = vmatmul.mubr.msk.f32.gmra.mxu0 %vm517_vm1, %v1197_v24 }
 0x1e1   :  { %1150 = vmatprep.mubr.f32.mxu0 %v1298_v13 }
 0x1e2   :  { %1212 = vmatmul.mubr.msk.f32.gmra.mxu1 %vm517_vm1, %v509_v7 }
 0x1e3   :  { %1039 = vmatprep.mubr.f32.mxu1 %v1298_v13 }
 0x1e4   :  { %1222 = vmatmul.mubr.msk.f32.gmra.mxu0 %vm517_vm1, %v1198_v25 }
 0x1e6   :  { %1213 = vmatmul.mubr.msk.f32.gmra.mxu1 %vm517_vm1, %v510_v9 }
 0x1e7   :  { %1045 = vmatprep.mubr.f32.mxu1 %v1298_v13 }
 0x1ea   :  { %1214 = vmatmul.mubr.msk.f32.gmra.mxu1 %vm517_vm1, %v511_v11 }
 0x26f   :  { %v596_v26 = vpop.f32.mrf.mxu0 }
 0x271   :  { %v598_v27 = vpop.f32.mrf.mxu0  ;;  %v608_v35 = vpop.f32.mrf.mxu1 }
 0x273   :  { %v602_v28 = vpop.f32.mrf.mxu0  ;;  %v610_v38 = vpop.f32.mrf.mxu1 }
 0x275   :  { %v604_v29 = vpop.f32.mrf.mxu0  ;;  %v614_v41 = vpop.f32.mrf.mxu1 }
 0x277   :  { %v697_v30 = vpop.f32.mrf.mxu0  ;;  %v616_v43 = vpop.f32.mrf.mxu1 }
 0x278   :  { %v698_v44 = vadd.f32 %v697_v30, %v596_v26 }
 0x279   :  { %v699_v31 = vpop.f32.mrf.mxu0 }
 0x27a   :  { %v700_v47 = vadd.f32 %v699_v31, %v598_v27 }
 0x27b   :  { %v703_v32 = vpop.f32.mrf.mxu0 }
 0x27c   :  { %v704_v51 = vadd.f32 %v703_v32, %v602_v28 }
 0x27d   :  { %v705_v33 = vpop.f32.mrf.mxu0 }
 0x27e   :  { %v706_v55 = vadd.f32 %v705_v33, %v604_v29 }
 0x27f   :  { %v709_v34 = vpop.f32.mrf.mxu0 }
 0x280   :  { %v710_v59 = vadd.f32 %v709_v34, %v608_v35 }
 0x281   :  { %v711_v36 = vpop.f32.mrf.mxu0 }
 0x282   :  { %v712_v63 = vadd.f32 %v711_v36, %v610_v38 }
 0x283   :  { %v715_v37 = vpop.f32.mrf.mxu0 }
 0x284   :  { %v716_v3 = vadd.f32 %v715_v37, %v614_v41 }
 0x285   :  { %v717_v39 = vpop.f32.mrf.mxu0 }
 0x286   :  { %v718_v7 = vadd.f32 %v717_v39, %v616_v43 }
 0x287   :  { %v928_v40 = vpop.f32.mrf.mxu0 }
 0x289   :  { %v930_v42 = vpop.f32.mrf.mxu0 }
 0x28b   :  { %v934_v13 = vpop.f32.mrf.mxu0 }
 0x28d   :  { %v936_v45 = vpop.f32.mrf.mxu0 }
 0x28e   :  { %v803_v46 = vpop.f32.mrf.mxu1 }
 0x28f   :  { %v826_v48 = vadd.f32 %v803_v46, %v698_v44 }
 0x290   :  { %v805_v49 = vpop.f32.mrf.mxu1  ;;  %v940_v50 = vpop.f32.mrf.mxu0 }
 0x291   :  { %834 = vst [vmem:[%s1534_s4] sm:$0xff] %v826_v48  ;;  %v827_v52 = vadd.f32 %v805_v49, %v700_v47 }
 0x292   :  { %v809_v53 = vpop.f32.mrf.mxu1  ;;  %v942_v54 = vpop.f32.mrf.mxu0 }
 0x293   :  { %835 = vst [vmem:[%s1534_s4 + $0x8] sm:$0xff] %v827_v52  ;;  %v828_v56 = vadd.f32 %v809_v53, %v704_v51 }
 0x294   :  { %v811_v57 = vpop.f32.mrf.mxu1  ;;  %v946_v58 = vpop.f32.mrf.mxu0 }
 0x295   :  { %836 = vst [vmem:[%s1534_s4 + $0x10] sm:$0xff] %v828_v56  ;;  %v829_v60 = vadd.f32 %v811_v57, %v706_v55 }
 0x296   :  { %v815_v61 = vpop.f32.mrf.mxu1  ;;  %v948_v62 = vpop.f32.mrf.mxu0 }
 0x297   :  { %837 = vst [vmem:[%s1534_s4 + $0x18] sm:$0xff] %v829_v60  ;;  %v830_v0 = vadd.f32 %v815_v61, %v710_v59 }
 0x298   :  { %v817_v1 = vpop.f32.mrf.mxu1  ;;  %v1134_v2 = vpop.f32.mrf.mxu0 }
 0x299   :  { %838 = vst [vmem:[%s1534_s4 + $0x20] sm:$0xff] %v830_v0  ;;  %v831_v4 = vadd.f32 %v817_v1, %v712_v63 }
 0x29a   :  { %v821_v5 = vpop.f32.mrf.mxu1  ;;  %v1136_v6 = vpop.f32.mrf.mxu0 }
 0x29b   :  { %839 = vst [vmem:[%s1534_s4 + $0x28] sm:$0xff] %v831_v4  ;;  %v832_v8 = vadd.f32 %v821_v5, %v716_v3 }
 0x29c   :  { %v823_v9 = vpop.f32.mrf.mxu1  ;;  %v1140_v10 = vpop.f32.mrf.mxu0 }
 0x29d   :  { %840 = vst [vmem:[%s1534_s4 + $0x30] sm:$0xff] %v832_v8  ;;  %v833_v11 = vadd.f32 %v823_v9, %v718_v7 }
 0x29e   :  { %v1029_v12 = vpop.f32.mrf.mxu1  ;;  %v1142_v14 = vpop.f32.mrf.mxu0 }
 0x29f   :  { %841 = vst [vmem:[%s1534_s4 + $0x38] sm:$0xff] %v833_v11  ;;  %v1030_v15 = vadd.f32 %v1029_v12, %v928_v40 }
 0x2a0   :  { %v1031_v16 = vpop.f32.mrf.mxu1  ;;  %v1146_v20 = vpop.f32.mrf.mxu0 }
 0x2a1   :  { %v1032_v17 = vadd.f32 %v1031_v16, %v930_v42  ;;  %v1157_v18 = vadd.f32 %v1134_v2, %v1030_v15 }
 0x2a2   :  { %v1035_v19 = vpop.f32.mrf.mxu1  ;;  %v1148_v27 = vpop.f32.mrf.mxu0 }
 0x2a3   :  { %1223 = vst [vmem:[%s1534_s4 + $0x40] sm:$0xff] %v1157_v18  ;;  %v1036_v21 = vadd.f32 %v1035_v19, %v934_v13  ;;  %v1158_v22 = vadd.f32 %v1136_v6, %v1032_v17 }
 0x2a4   :  { %v1037_v23 = vpop.f32.mrf.mxu1  ;;  %v1152_v34 = vpop.f32.mrf.mxu0 }
 0x2a5   :  { %1224 = vst [vmem:[%s1534_s4 + $0x48] sm:$0xff] %v1158_v22  ;;  %v1038_v24 = vadd.f32 %v1037_v23, %v936_v45  ;;  %v1159_v25 = vadd.f32 %v1140_v10, %v1036_v21 }
 0x2a6   :  { %v1041_v26 = vpop.f32.mrf.mxu1  ;;  %v1154_v40 = vpop.f32.mrf.mxu0 }
 0x2a7   :  { %1225 = vst [vmem:[%s1534_s4 + $0x50] sm:$0xff] %v1159_v25  ;;  %v1042_v28 = vadd.f32 %v1041_v26, %v940_v50  ;;  %v1160_v29 = vadd.f32 %v1142_v14, %v1038_v24 }
 0x2a8   :  { %v1043_v30 = vpop.f32.mrf.mxu1 }
 0x2a9   :  { %1226 = vst [vmem:[%s1534_s4 + $0x58] sm:$0xff] %v1160_v29  ;;  %v1044_v31 = vadd.f32 %v1043_v30, %v942_v54  ;;  %v1161_v32 = vadd.f32 %v1146_v20, %v1042_v28 }
 0x2aa   :  { %v1047_v33 = vpop.f32.mrf.mxu1 }
 0x2ab   :  { %1227 = vst [vmem:[%s1534_s4 + $0x60] sm:$0xff] %v1161_v32  ;;  %v1048_v35 = vadd.f32 %v1047_v33, %v946_v58  ;;  %v1162_v36 = vadd.f32 %v1148_v27, %v1044_v31 }
 0x2ac   :  { %v1049_v37 = vpop.f32.mrf.mxu1 }
 0x2ad   :  { %1228 = vst [vmem:[%s1534_s4 + $0x68] sm:$0xff] %v1162_v36  ;;  %v1050_v38 = vadd.f32 %v1049_v37, %v948_v62  ;;  %v1163_v39 = vadd.f32 %v1152_v34, %v1048_v35 }
 0x2af   :  { %1229 = vst [vmem:[%s1534_s4 + $0x70] sm:$0xff] %v1163_v39  ;;  %v1164_v41 = vadd.f32 %v1154_v40, %v1050_v38 }
 0x2b1   :  { %1230 = vst [vmem:[%s1534_s4 + $0x78] sm:$0xff] %v1164_v41 }
 0x2b2   :  { %1178 = vsyncpa [#allocation3], 1 }

</bundles_post_ra>
